<compile_context>
chip_gen: v5e
topology: v5e:2x2
jax: 0.10.0
libtpu: 0.0.40
codegen_flags: <defaults>
</compile_context>

<pallas_src>
import jax
import jax.numpy as jnp
from jax import lax
from jax.experimental import pallas as pl
from jax.experimental.pallas import tpu as pltpu

EPS = 1e-5


def _conv_band_weights(w, width):
    """(3,3,Cin,Cout) conv weights -> (3, width*Cin, width*Cout) banded matrices.

    Band dy implements the stride-1, pad-1 convolution along W as a dense
    matmul:  y_slab[:, x*Cout+o] += x_slab[:, xx*Cin+c] * w[dy,dx,c,o] for
    xx = x+dx-1 inside [0, width); out-of-range taps are simply absent, which
    is exactly zero-padding in W.
    """
    kh, kw, cin, cout = w.shape
    bands = []
    for dy in range(kh):
        t = jnp.zeros((width, cin, width, cout), jnp.float32)
        for dx in range(kw):
            e = jnp.eye(width, width, k=1 - dx, dtype=jnp.float32)
            t = t + e[:, None, :, None] * w[dy, dx][None, :, None, :]
        bands.append(t.reshape(width * cin, width * cout))
    return jnp.stack(bands)                      # (3, width*Cin, width*Cout)


def _make_resblock_kernel(N, H, W, Cin, Cout):
    M = N * H                                    # slab rows
    LW = W * Cout                                # slab lanes (128 for the demo)
    inv_cnt = 1.0 / float(N * H * W)

    def kernel(xh_ref, b1s_ref, b2_ref, cb1s_ref, cb2_ref,
               gb1_ref, gb2_ref, gbs_ref, fold_ref, unfold_ref,
               out_ref, a1p_ref):

        def bn(y, gb_ref):
            # Single-pass training-mode BatchNorm on the lane slab.
            # Per-(x,o) lane sums, then fold W positions into channels with a
            # tiny constant matmul; broadcast scale/shift back the same way.
            s1 = jnp.sum(y, axis=0, keepdims=True)                    # (1, LW)
            s2 = jnp.sum(y * y, axis=0, keepdims=True)                # (1, LW)
            sc = jnp.dot(jnp.concatenate([s1, s2], axis=0), fold_ref[...],
                         preferred_element_type=jnp.float32)          # (2, Cout)
            mean = sc[0:1] * inv_cnt
            var = sc[1:2] * inv_cnt - mean * mean                     # E[x^2]-E[x]^2
            scale = gb_ref[0:1] * lax.rsqrt(var + EPS)                # gamma / std
            shift = gb_ref[1:2] - mean * scale                        # beta - mean*scale
            aff = jnp.dot(jnp.concatenate([scale, shift], axis=0), unfold_ref[...],
                          preferred_element_type=jnp.float32)         # (2, LW)
            return y * aff[0:1] + aff[1:2]

        # ---- conv1 + shortcut conv (fused: shared input slabs, concatenated
        #      banded weights -> one (M, 2*LW) accumulator) --------------------
        acc = jnp.zeros((M, 2 * LW), jnp.float32)
        for dy in range(3):                                           # static unroll
            xs = xh_ref[:, dy:dy + H, :].reshape(M, W * Cin)          # bf16 slab
            acc = acc + jnp.dot(xs, b1s_ref[dy],
                                preferred_element_type=jnp.float32)
        y1s = acc + cb1s_ref[...]                                     # conv biases
        a1 = jnp.maximum(bn(y1s[:, :LW], gb1_ref), 0.0)               # conv1->BN->ReLU
        out2 = bn(y1s[:, LW:], gbs_ref)                               # shortcut->BN

        # ---- re-pad a1 along H only (lane dim stays 128-aligned); zero just
        #      the halo rows, store the interior once ------------------------
        zrow = jnp.zeros((N, 1, LW), jnp.float32)
        a1p_ref[:, 0:1, :] = zrow
        a1p_ref[:, H + 1:H + 2, :] = zrow
        a1p_ref[:, 1:H + 1, :] = a1.reshape(N, H, LW)

        # ---- conv2 -> BN ----------------------------------------------------
        acc2 = jnp.zeros((M, LW), jnp.float32)
        for dy in range(3):
            a1s = a1p_ref[:, dy:dy + H, :].reshape(M, LW).astype(jnp.bfloat16)
            acc2 = acc2 + jnp.dot(a1s, b2_ref[dy],
                                  preferred_element_type=jnp.float32)
        out1 = bn(acc2 + cb2_ref[...], gb2_ref)

        # ---- residual add + ReLU, lane-dense (M, W*Cout) store ---------------
        out_ref[...] = jnp.maximum(out1 + out2, 0.0).astype(out_ref.dtype)

    return kernel


def resblock_forward(x_nchw, params):
    """x_nchw: (N, Cin, H, W) float32 -> (N, Cout, H, W) float32."""
    N, Cin, H, W = x_nchw.shape
    Cout = params["w1"].shape[-1]
    LW = W * Cout

    # ---- wrapper layout plumbing: NCHW -> NHWC, H-halo pad, flatten (W,Cin) ----
    x = jnp.transpose(x_nchw, (0, 2, 3, 1))                    # (N, H, W, Cin)
    xh = jnp.pad(x, ((0, 0), (1, 1), (0, 0), (0, 0)))          # pad H only
    xh = xh.reshape(N, H + 2, W * Cin).astype(jnp.bfloat16)    # (N, H+2, W*Cin)

    # banded conv weights (conv1 and shortcut fused along the output axis)
    band1 = _conv_band_weights(params["w1"], W)
    bands = _conv_band_weights(params["ws"], W)
    band_1s = jnp.concatenate([band1, bands], axis=-1).astype(jnp.bfloat16)
    band2 = _conv_band_weights(params["w2"], W).astype(jnp.bfloat16)

    # per-channel params: lane-tiled biases, stacked (gamma, beta), fold matrices
    def lane_tile(v):                                          # (Cout,) -> (1, W*Cout)
        return jnp.tile(v.reshape(1, Cout), (1, W)).astype(jnp.float32)

    cb1s = jnp.concatenate([lane_tile(params["cb1"]), lane_tile(params["cbs"])], axis=1)
    cb2 = lane_tile(params["cb2"])
    gb1 = jnp.stack([params["g1"], params["b1"]]).astype(jnp.float32)   # (2, Cout)
    gb2 = jnp.stack([params["g2"], params["b2"]]).astype(jnp.float32)
    gbs = jnp.stack([params["gs"], params["bs"]]).astype(jnp.float32)
    fold = jnp.tile(jnp.eye(Cout, dtype=jnp.float32), (W, 1))           # (W*Cout, Cout)
    unfold = fold.T                                                     # (Cout, W*Cout)

    kernel = _make_resblock_kernel(N, H, W, Cin, Cout)

    flops = 2 * (3 * N * H * (W * Cin) * (2 * LW) + 3 * N * H * LW * LW)
    bytes_accessed = (xh.size * 2 + band_1s.size * 2 + band2.size * 2
                      + N * H * LW * 4 + 8192)

    out_slab = pl.pallas_call(
        kernel,
        out_shape=jax.ShapeDtypeStruct((N * H, LW), jnp.float32),
        in_specs=[pl.BlockSpec(memory_space=pltpu.MemorySpace.VMEM)] * 10,
        out_specs=pl.BlockSpec(memory_space=pltpu.MemorySpace.VMEM),
        scratch_shapes=[pltpu.VMEM((N, H + 2, LW), jnp.float32)],
        compiler_params=pltpu.CompilerParams(vmem_limit_bytes=64 * 1024 * 1024),
        cost_estimate=pl.CostEstimate(flops=flops, transcendentals=3 * Cout,
                                      bytes_accessed=bytes_accessed),
    )(xh, band_1s, band2, cb1s, cb2, gb1, gb2, gbs, fold, unfold)

    out = out_slab.reshape(N, H, W, Cout)                      # slab -> NHWC
    return jnp.transpose(out, (0, 3, 1, 2))                    # NHWC -> NCHW


def init_params(key, cin, cout):
    ks = jax.random.split(key, 12)

    def conv_w(k, ci):
        return 0.1 * jax.random.normal(k, (3, 3, ci, cout), jnp.float32)

    def vec(k, base=0.0):
        return base + 0.1 * jax.random.normal(k, (cout,), jnp.float32)

    return dict(
        w1=conv_w(ks[0], cin), cb1=vec(ks[1]), g1=vec(ks[2], 1.0), b1=vec(ks[3]),
        w2=conv_w(ks[4], cout), cb2=vec(ks[5]), g2=vec(ks[6], 1.0), b2=vec(ks[7]),
        ws=conv_w(ks[8], cin), cbs=vec(ks[9]), gs=vec(ks[10], 1.0), bs=vec(ks[11]),
    )


def ref_forward(x_nchw, p):
    """Pure-JAX f32 reference (training-mode BN) for the correctness check."""
    def conv(x, w, b):
        y = lax.conv_general_dilated(
            x, w, window_strides=(1, 1), padding=((1, 1), (1, 1)),
            dimension_numbers=("NHWC", "HWIO", "NHWC"))
        return y + b.reshape(1, 1, 1, -1)

    def bn(y, g, b):
        m = y.mean((0, 1, 2), keepdims=True)
        v = jnp.square(y - m).mean((0, 1, 2), keepdims=True)
        return (g.reshape(1, 1, 1, -1) * (y - m) * lax.rsqrt(v + EPS)
                + b.reshape(1, 1, 1, -1))

    x = jnp.transpose(x_nchw, (0, 2, 3, 1))
    a1 = jax.nn.relu(bn(conv(x, p["w1"], p["cb1"]), p["g1"], p["b1"]))
    o1 = bn(conv(a1, p["w2"], p["cb2"]), p["g2"], p["b2"])
    o2 = bn(conv(x, p["ws"], p["cbs"]), p["gs"], p["bs"])
    return jnp.transpose(jax.nn.relu(o1 + o2), (0, 3, 1, 2))


if __name__ == "__main__":
    N, Cin, Cout, H, W = 2, 4, 8, 16, 16            # in_channel != out_channel
    key = jax.random.PRNGKey(0)
    kx, kp = jax.random.split(key)
    x = jax.random.normal(kx, (N, Cin, H, W), jnp.float32)
    params = init_params(kp, Cin, Cout)

    out = jax.block_until_ready(resblock_forward(x, params))
    ref = ref_forward(x, params)

    assert out.shape == (N, Cout, H, W)
    # Tolerance accounts for bf16 MXU inputs (reference is pure f32).
    assert jnp.allclose(out, ref, atol=5e-2, rtol=5e-2), \
        float(jnp.max(jnp.abs(out - ref)))

    print("KERNEL_OK")
</pallas_src>

<mosaic_0001>
module attributes {stable_mosaic.version = 11 : i64} {
  func.func @kernel(%arg0: memref<2x18x64xbf16, #tpu.memory_space<vmem>>, %arg1: memref<3x64x256xbf16, #tpu.memory_space<vmem>>, %arg2: memref<3x128x128xbf16, #tpu.memory_space<vmem>>, %arg3: memref<1x256xf32, #tpu.memory_space<vmem>>, %arg4: memref<1x128xf32, #tpu.memory_space<vmem>>, %arg5: memref<2x8xf32, #tpu.memory_space<vmem>>, %arg6: memref<2x8xf32, #tpu.memory_space<vmem>>, %arg7: memref<2x8xf32, #tpu.memory_space<vmem>>, %arg8: memref<128x8xf32, #tpu.memory_space<vmem>>, %arg9: memref<8x128xf32, #tpu.memory_space<vmem>>, %arg10: memref<32x128xf32, #tpu.memory_space<vmem>>, %arg11: memref<2x18x128xf32, #tpu.memory_space<vmem>>) attributes {dimension_semantics = [], scalar_prefetch = 0 : i64, scratch_operands = 1 : i64, tpu.core_type = #tpu.core_type<tc>} {
    %cst = arith.constant 0.000000e+00 : f32
    %0 = vector.broadcast %cst : f32 to vector<32x256xf32>
    %c0 = arith.constant 0 : index
    %c0_0 = arith.constant 0 : index
    %c0_1 = arith.constant 0 : index
    %1 = vector.load %arg0[%c0, %c0_0, %c0_1] : memref<2x18x64xbf16, #tpu.memory_space<vmem>>, vector<2x16x64xbf16>
    %2 = vector.shape_cast %1 : vector<2x16x64xbf16> to vector<32x64xbf16>
    %c0_2 = arith.constant 0 : index
    %c0_3 = arith.constant 0 : index
    %c0_4 = arith.constant 0 : index
    %3 = vector.load %arg1[%c0_2, %c0_3, %c0_4] : memref<3x64x256xbf16, #tpu.memory_space<vmem>>, vector<1x64x256xbf16>
    %4 = vector.shape_cast %3 : vector<1x64x256xbf16> to vector<64x256xbf16>
    %cst_5 = arith.constant dense<0.000000e+00> : vector<32x256xf32>
    %5 = tpu.matmul %2, %4, %cst_5 {dimension_numbers = #tpu.dot_dimension_numbers<[1], [0], [0], [1], [0, 0, 1, 1], [], []>} : vector<32x64xbf16>, vector<64x256xbf16>, vector<32x256xf32> -> vector<32x256xf32>
    %6 = arith.addf %0, %5 : vector<32x256xf32>
    %c0_6 = arith.constant 0 : index
    %c1 = arith.constant 1 : index
    %c0_7 = arith.constant 0 : index
    %7 = vector.load %arg0[%c0_6, %c1, %c0_7] : memref<2x18x64xbf16, #tpu.memory_space<vmem>>, vector<2x16x64xbf16>
    %8 = vector.shape_cast %7 : vector<2x16x64xbf16> to vector<32x64xbf16>
    %c1_8 = arith.constant 1 : index
    %c0_9 = arith.constant 0 : index
    %c0_10 = arith.constant 0 : index
    %9 = vector.load %arg1[%c1_8, %c0_9, %c0_10] : memref<3x64x256xbf16, #tpu.memory_space<vmem>>, vector<1x64x256xbf16>
    %10 = vector.shape_cast %9 : vector<1x64x256xbf16> to vector<64x256xbf16>
    %cst_11 = arith.constant dense<0.000000e+00> : vector<32x256xf32>
    %11 = tpu.matmul %8, %10, %cst_11 {dimension_numbers = #tpu.dot_dimension_numbers<[1], [0], [0], [1], [0, 0, 1, 1], [], []>} : vector<32x64xbf16>, vector<64x256xbf16>, vector<32x256xf32> -> vector<32x256xf32>
    %12 = arith.addf %6, %11 : vector<32x256xf32>
    %c0_12 = arith.constant 0 : index
    %c2 = arith.constant 2 : index
    %c0_13 = arith.constant 0 : index
    %13 = vector.load %arg0[%c0_12, %c2, %c0_13] : memref<2x18x64xbf16, #tpu.memory_space<vmem>>, vector<2x16x64xbf16>
    %14 = vector.shape_cast %13 : vector<2x16x64xbf16> to vector<32x64xbf16>
    %c2_14 = arith.constant 2 : index
    %c0_15 = arith.constant 0 : index
    %c0_16 = arith.constant 0 : index
    %15 = vector.load %arg1[%c2_14, %c0_15, %c0_16] : memref<3x64x256xbf16, #tpu.memory_space<vmem>>, vector<1x64x256xbf16>
    %16 = vector.shape_cast %15 : vector<1x64x256xbf16> to vector<64x256xbf16>
    %cst_17 = arith.constant dense<0.000000e+00> : vector<32x256xf32>
    %17 = tpu.matmul %14, %16, %cst_17 {dimension_numbers = #tpu.dot_dimension_numbers<[1], [0], [0], [1], [0, 0, 1, 1], [], []>} : vector<32x64xbf16>, vector<64x256xbf16>, vector<32x256xf32> -> vector<32x256xf32>
    %18 = arith.addf %12, %17 : vector<32x256xf32>
    %c0_18 = arith.constant 0 : index
    %c0_19 = arith.constant 0 : index
    %19 = vector.load %arg3[%c0_18, %c0_19] : memref<1x256xf32, #tpu.memory_space<vmem>>, vector<1x256xf32>
    %20 = vector.broadcast %19 : vector<1x256xf32> to vector<32x256xf32>
    %21 = arith.addf %18, %20 : vector<32x256xf32>
    %22 = vector.extract_strided_slice %21 {offsets = [0, 0], sizes = [32, 128], strides = [1, 1]} : vector<32x256xf32> to vector<32x128xf32>
    %cst_20 = arith.constant dense<0.000000e+00> : vector<128xf32>
    %23 = vector.multi_reduction <add>, %22, %cst_20 [0] : vector<32x128xf32> to vector<128xf32>
    %24 = vector.shape_cast %23 : vector<128xf32> to vector<1x128xf32>
    %25 = arith.mulf %22, %22 : vector<32x128xf32>
    %cst_21 = arith.constant dense<0.000000e+00> : vector<128xf32>
    %26 = vector.multi_reduction <add>, %25, %cst_21 [0] : vector<32x128xf32> to vector<128xf32>
    %27 = vector.shape_cast %26 : vector<128xf32> to vector<1x128xf32>
    %28 = tpu.concatenate %24, %27 in 0 : vector<1x128xf32>, vector<1x128xf32> -> vector<2x128xf32>
    %c0_22 = arith.constant 0 : index
    %c0_23 = arith.constant 0 : index
    %29 = vector.load %arg8[%c0_22, %c0_23] : memref<128x8xf32, #tpu.memory_space<vmem>>, vector<128x8xf32>
    %cst_24 = arith.constant dense<0.000000e+00> : vector<2x8xf32>
    %30 = tpu.matmul %28, %29, %cst_24 {dimension_numbers = #tpu.dot_dimension_numbers<[1], [0], [0], [1], [0, 0, 1, 1], [], []>} : vector<2x128xf32>, vector<128x8xf32>, vector<2x8xf32> -> vector<2x8xf32>
    %31 = vector.extract_strided_slice %30 {offsets = [0, 0], sizes = [1, 8], strides = [1, 1]} : vector<2x8xf32> to vector<1x8xf32>
    %cst_25 = arith.constant 0.001953125 : f32
    %32 = vector.broadcast %cst_25 : f32 to vector<1x8xf32>
    %33 = arith.mulf %31, %32 : vector<1x8xf32>
    %34 = vector.extract_strided_slice %30 {offsets = [1, 0], sizes = [1, 8], strides = [1, 1]} : vector<2x8xf32> to vector<1x8xf32>
    %cst_26 = arith.constant 0.001953125 : f32
    %35 = vector.broadcast %cst_26 : f32 to vector<1x8xf32>
    %36 = arith.mulf %34, %35 : vector<1x8xf32>
    %37 = arith.mulf %33, %33 : vector<1x8xf32>
    %38 = arith.subf %36, %37 : vector<1x8xf32>
    %c0_27 = arith.constant 0 : index
    %c0_28 = arith.constant 0 : index
    %39 = vector.load %arg5[%c0_27, %c0_28] : memref<2x8xf32, #tpu.memory_space<vmem>>, vector<1x8xf32>
    %cst_29 = arith.constant 9.99999974E-6 : f32
    %40 = vector.broadcast %cst_29 : f32 to vector<1x8xf32>
    %41 = arith.addf %38, %40 : vector<1x8xf32>
    %42 = math.rsqrt %41 : vector<1x8xf32>
    %43 = arith.mulf %39, %42 : vector<1x8xf32>
    %c1_30 = arith.constant 1 : index
    %c0_31 = arith.constant 0 : index
    %44 = vector.load %arg5[%c1_30, %c0_31] : memref<2x8xf32, #tpu.memory_space<vmem>>, vector<1x8xf32>
    %45 = arith.mulf %33, %43 : vector<1x8xf32>
    %46 = arith.subf %44, %45 : vector<1x8xf32>
    %47 = tpu.concatenate %43, %46 in 0 : vector<1x8xf32>, vector<1x8xf32> -> vector<2x8xf32>
    %c0_32 = arith.constant 0 : index
    %c0_33 = arith.constant 0 : index
    %48 = vector.load %arg9[%c0_32, %c0_33] : memref<8x128xf32, #tpu.memory_space<vmem>>, vector<8x128xf32>
    %cst_34 = arith.constant dense<0.000000e+00> : vector<2x128xf32>
    %49 = tpu.matmul %47, %48, %cst_34 {dimension_numbers = #tpu.dot_dimension_numbers<[1], [0], [0], [1], [0, 0, 1, 1], [], []>} : vector<2x8xf32>, vector<8x128xf32>, vector<2x128xf32> -> vector<2x128xf32>
    %50 = vector.extract_strided_slice %49 {offsets = [0, 0], sizes = [1, 128], strides = [1, 1]} : vector<2x128xf32> to vector<1x128xf32>
    %51 = vector.broadcast %50 : vector<1x128xf32> to vector<32x128xf32>
    %52 = arith.mulf %22, %51 : vector<32x128xf32>
    %53 = vector.extract_strided_slice %49 {offsets = [1, 0], sizes = [1, 128], strides = [1, 1]} : vector<2x128xf32> to vector<1x128xf32>
    %54 = vector.broadcast %53 : vector<1x128xf32> to vector<32x128xf32>
    %55 = arith.addf %52, %54 : vector<32x128xf32>
    %cst_35 = arith.constant 0.000000e+00 : f32
    %56 = vector.broadcast %cst_35 : f32 to vector<32x128xf32>
    %57 = arith.maximumf %55, %56 : vector<32x128xf32>
    %58 = vector.extract_strided_slice %21 {offsets = [0, 128], sizes = [32, 128], strides = [1, 1]} : vector<32x256xf32> to vector<32x128xf32>
    %cst_36 = arith.constant dense<0.000000e+00> : vector<128xf32>
    %59 = vector.multi_reduction <add>, %58, %cst_36 [0] : vector<32x128xf32> to vector<128xf32>
    %60 = vector.shape_cast %59 : vector<128xf32> to vector<1x128xf32>
    %61 = arith.mulf %58, %58 : vector<32x128xf32>
    %cst_37 = arith.constant dense<0.000000e+00> : vector<128xf32>
    %62 = vector.multi_reduction <add>, %61, %cst_37 [0] : vector<32x128xf32> to vector<128xf32>
    %63 = vector.shape_cast %62 : vector<128xf32> to vector<1x128xf32>
    %64 = tpu.concatenate %60, %63 in 0 : vector<1x128xf32>, vector<1x128xf32> -> vector<2x128xf32>
    %c0_38 = arith.constant 0 : index
    %c0_39 = arith.constant 0 : index
    %65 = vector.load %arg8[%c0_38, %c0_39] : memref<128x8xf32, #tpu.memory_space<vmem>>, vector<128x8xf32>
    %cst_40 = arith.constant dense<0.000000e+00> : vector<2x8xf32>
    %66 = tpu.matmul %64, %65, %cst_40 {dimension_numbers = #tpu.dot_dimension_numbers<[1], [0], [0], [1], [0, 0, 1, 1], [], []>} : vector<2x128xf32>, vector<128x8xf32>, vector<2x8xf32> -> vector<2x8xf32>
    %67 = vector.extract_strided_slice %66 {offsets = [0, 0], sizes = [1, 8], strides = [1, 1]} : vector<2x8xf32> to vector<1x8xf32>
    %cst_41 = arith.constant 0.001953125 : f32
    %68 = vector.broadcast %cst_41 : f32 to vector<1x8xf32>
    %69 = arith.mulf %67, %68 : vector<1x8xf32>
    %70 = vector.extract_strided_slice %66 {offsets = [1, 0], sizes = [1, 8], strides = [1, 1]} : vector<2x8xf32> to vector<1x8xf32>
    %cst_42 = arith.constant 0.001953125 : f32
    %71 = vector.broadcast %cst_42 : f32 to vector<1x8xf32>
    %72 = arith.mulf %70, %71 : vector<1x8xf32>
    %73 = arith.mulf %69, %69 : vector<1x8xf32>
    %74 = arith.subf %72, %73 : vector<1x8xf32>
    %c0_43 = arith.constant 0 : index
    %c0_44 = arith.constant 0 : index
    %75 = vector.load %arg7[%c0_43, %c0_44] : memref<2x8xf32, #tpu.memory_space<vmem>>, vector<1x8xf32>
    %cst_45 = arith.constant 9.99999974E-6 : f32
    %76 = vector.broadcast %cst_45 : f32 to vector<1x8xf32>
    %77 = arith.addf %74, %76 : vector<1x8xf32>
    %78 = math.rsqrt %77 : vector<1x8xf32>
    %79 = arith.mulf %75, %78 : vector<1x8xf32>
    %c1_46 = arith.constant 1 : index
    %c0_47 = arith.constant 0 : index
    %80 = vector.load %arg7[%c1_46, %c0_47] : memref<2x8xf32, #tpu.memory_space<vmem>>, vector<1x8xf32>
    %81 = arith.mulf %69, %79 : vector<1x8xf32>
    %82 = arith.subf %80, %81 : vector<1x8xf32>
    %83 = tpu.concatenate %79, %82 in 0 : vector<1x8xf32>, vector<1x8xf32> -> vector<2x8xf32>
    %c0_48 = arith.constant 0 : index
    %c0_49 = arith.constant 0 : index
    %84 = vector.load %arg9[%c0_48, %c0_49] : memref<8x128xf32, #tpu.memory_space<vmem>>, vector<8x128xf32>
    %cst_50 = arith.constant dense<0.000000e+00> : vector<2x128xf32>
    %85 = tpu.matmul %83, %84, %cst_50 {dimension_numbers = #tpu.dot_dimension_numbers<[1], [0], [0], [1], [0, 0, 1, 1], [], []>} : vector<2x8xf32>, vector<8x128xf32>, vector<2x128xf32> -> vector<2x128xf32>
    %86 = vector.extract_strided_slice %85 {offsets = [0, 0], sizes = [1, 128], strides = [1, 1]} : vector<2x128xf32> to vector<1x128xf32>
    %87 = vector.broadcast %86 : vector<1x128xf32> to vector<32x128xf32>
    %88 = arith.mulf %58, %87 : vector<32x128xf32>
    %89 = vector.extract_strided_slice %85 {offsets = [1, 0], sizes = [1, 128], strides = [1, 1]} : vector<2x128xf32> to vector<1x128xf32>
    %90 = vector.broadcast %89 : vector<1x128xf32> to vector<32x128xf32>
    %91 = arith.addf %88, %90 : vector<32x128xf32>
    %cst_51 = arith.constant 0.000000e+00 : f32
    %92 = vector.broadcast %cst_51 : f32 to vector<2x1x128xf32>
    %c0_52 = arith.constant 0 : index
    %c0_53 = arith.constant 0 : index
    %c0_54 = arith.constant 0 : index
    %93 = vector.load %arg11[%c0_52, %c0_53, %c0_54] : memref<2x18x128xf32, #tpu.memory_space<vmem>>, vector<2x1x128xf32>
    tpu.vector_store %arg11[%c0_52, %c0_53, %c0_54], %92 {strides = array<i32>} : memref<2x18x128xf32, #tpu.memory_space<vmem>>, vector<2x1x128xf32>,
    %c0_55 = arith.constant 0 : index
    %c17 = arith.constant 17 : index
    %c0_56 = arith.constant 0 : index
    %94 = vector.load %arg11[%c0_55, %c17, %c0_56] : memref<2x18x128xf32, #tpu.memory_space<vmem>>, vector<2x1x128xf32>
    tpu.vector_store %arg11[%c0_55, %c17, %c0_56], %92 {strides = array<i32>} : memref<2x18x128xf32, #tpu.memory_space<vmem>>, vector<2x1x128xf32>,
    %95 = vector.shape_cast %57 : vector<32x128xf32> to vector<2x16x128xf32>
    %c0_57 = arith.constant 0 : index
    %c1_58 = arith.constant 1 : index
    %c0_59 = arith.constant 0 : index
    %96 = vector.load %arg11[%c0_57, %c1_58, %c0_59] : memref<2x18x128xf32, #tpu.memory_space<vmem>>, vector<2x16x128xf32>
    tpu.vector_store %arg11[%c0_57, %c1_58, %c0_59], %95 {strides = array<i32>} : memref<2x18x128xf32, #tpu.memory_space<vmem>>, vector<2x16x128xf32>,
    %cst_60 = arith.constant 0.000000e+00 : f32
    %97 = vector.broadcast %cst_60 : f32 to vector<32x128xf32>
    %c0_61 = arith.constant 0 : index
    %c0_62 = arith.constant 0 : index
    %c0_63 = arith.constant 0 : index
    %98 = vector.load %arg11[%c0_61, %c0_62, %c0_63] : memref<2x18x128xf32, #tpu.memory_space<vmem>>, vector<2x16x128xf32>
    %99 = vector.shape_cast %98 : vector<2x16x128xf32> to vector<32x128xf32>
    %100 = arith.truncf %99 : vector<32x128xf32> to vector<32x128xbf16>
    %c0_64 = arith.constant 0 : index
    %c0_65 = arith.constant 0 : index
    %c0_66 = arith.constant 0 : index
    %101 = vector.load %arg2[%c0_64, %c0_65, %c0_66] : memref<3x128x128xbf16, #tpu.memory_space<vmem>>, vector<1x128x128xbf16>
    %102 = vector.shape_cast %101 : vector<1x128x128xbf16> to vector<128x128xbf16>
    %cst_67 = arith.constant dense<0.000000e+00> : vector<32x128xf32>
    %103 = tpu.matmul %100, %102, %cst_67 {dimension_numbers = #tpu.dot_dimension_numbers<[1], [0], [0], [1], [0, 0, 1, 1], [], []>} : vector<32x128xbf16>, vector<128x128xbf16>, vector<32x128xf32> -> vector<32x128xf32>
    %104 = arith.addf %97, %103 : vector<32x128xf32>
    %c0_68 = arith.constant 0 : index
    %c1_69 = arith.constant 1 : index
    %c0_70 = arith.constant 0 : index
    %105 = vector.load %arg11[%c0_68, %c1_69, %c0_70] : memref<2x18x128xf32, #tpu.memory_space<vmem>>, vector<2x16x128xf32>
    %106 = vector.shape_cast %105 : vector<2x16x128xf32> to vector<32x128xf32>
    %107 = arith.truncf %106 : vector<32x128xf32> to vector<32x128xbf16>
    %c1_71 = arith.constant 1 : index
    %c0_72 = arith.constant 0 : index
    %c0_73 = arith.constant 0 : index
    %108 = vector.load %arg2[%c1_71, %c0_72, %c0_73] : memref<3x128x128xbf16, #tpu.memory_space<vmem>>, vector<1x128x128xbf16>
    %109 = vector.shape_cast %108 : vector<1x128x128xbf16> to vector<128x128xbf16>
    %cst_74 = arith.constant dense<0.000000e+00> : vector<32x128xf32>
    %110 = tpu.matmul %107, %109, %cst_74 {dimension_numbers = #tpu.dot_dimension_numbers<[1], [0], [0], [1], [0, 0, 1, 1], [], []>} : vector<32x128xbf16>, vector<128x128xbf16>, vector<32x128xf32> -> vector<32x128xf32>
    %111 = arith.addf %104, %110 : vector<32x128xf32>
    %c0_75 = arith.constant 0 : index
    %c2_76 = arith.constant 2 : index
    %c0_77 = arith.constant 0 : index
    %112 = vector.load %arg11[%c0_75, %c2_76, %c0_77] : memref<2x18x128xf32, #tpu.memory_space<vmem>>, vector<2x16x128xf32>
    %113 = vector.shape_cast %112 : vector<2x16x128xf32> to vector<32x128xf32>
    %114 = arith.truncf %113 : vector<32x128xf32> to vector<32x128xbf16>
    %c2_78 = arith.constant 2 : index
    %c0_79 = arith.constant 0 : index
    %c0_80 = arith.constant 0 : index
    %115 = vector.load %arg2[%c2_78, %c0_79, %c0_80] : memref<3x128x128xbf16, #tpu.memory_space<vmem>>, vector<1x128x128xbf16>
    %116 = vector.shape_cast %115 : vector<1x128x128xbf16> to vector<128x128xbf16>
    %cst_81 = arith.constant dense<0.000000e+00> : vector<32x128xf32>
    %117 = tpu.matmul %114, %116, %cst_81 {dimension_numbers = #tpu.dot_dimension_numbers<[1], [0], [0], [1], [0, 0, 1, 1], [], []>} : vector<32x128xbf16>, vector<128x128xbf16>, vector<32x128xf32> -> vector<32x128xf32>
    %118 = arith.addf %111, %117 : vector<32x128xf32>
    %c0_82 = arith.constant 0 : index
    %c0_83 = arith.constant 0 : index
    %119 = vector.load %arg4[%c0_82, %c0_83] : memref<1x128xf32, #tpu.memory_space<vmem>>, vector<1x128xf32>
    %120 = vector.broadcast %119 : vector<1x128xf32> to vector<32x128xf32>
    %121 = arith.addf %118, %120 : vector<32x128xf32>
    %cst_84 = arith.constant dense<0.000000e+00> : vector<128xf32>
    %122 = vector.multi_reduction <add>, %121, %cst_84 [0] : vector<32x128xf32> to vector<128xf32>
    %123 = vector.shape_cast %122 : vector<128xf32> to vector<1x128xf32>
    %124 = arith.mulf %121, %121 : vector<32x128xf32>
    %cst_85 = arith.constant dense<0.000000e+00> : vector<128xf32>
    %125 = vector.multi_reduction <add>, %124, %cst_85 [0] : vector<32x128xf32> to vector<128xf32>
    %126 = vector.shape_cast %125 : vector<128xf32> to vector<1x128xf32>
    %127 = tpu.concatenate %123, %126 in 0 : vector<1x128xf32>, vector<1x128xf32> -> vector<2x128xf32>
    %c0_86 = arith.constant 0 : index
    %c0_87 = arith.constant 0 : index
    %128 = vector.load %arg8[%c0_86, %c0_87] : memref<128x8xf32, #tpu.memory_space<vmem>>, vector<128x8xf32>
    %cst_88 = arith.constant dense<0.000000e+00> : vector<2x8xf32>
    %129 = tpu.matmul %127, %128, %cst_88 {dimension_numbers = #tpu.dot_dimension_numbers<[1], [0], [0], [1], [0, 0, 1, 1], [], []>} : vector<2x128xf32>, vector<128x8xf32>, vector<2x8xf32> -> vector<2x8xf32>
    %130 = vector.extract_strided_slice %129 {offsets = [0, 0], sizes = [1, 8], strides = [1, 1]} : vector<2x8xf32> to vector<1x8xf32>
    %cst_89 = arith.constant 0.001953125 : f32
    %131 = vector.broadcast %cst_89 : f32 to vector<1x8xf32>
    %132 = arith.mulf %130, %131 : vector<1x8xf32>
    %133 = vector.extract_strided_slice %129 {offsets = [1, 0], sizes = [1, 8], strides = [1, 1]} : vector<2x8xf32> to vector<1x8xf32>
    %cst_90 = arith.constant 0.001953125 : f32
    %134 = vector.broadcast %cst_90 : f32 to vector<1x8xf32>
    %135 = arith.mulf %133, %134 : vector<1x8xf32>
    %136 = arith.mulf %132, %132 : vector<1x8xf32>
    %137 = arith.subf %135, %136 : vector<1x8xf32>
    %c0_91 = arith.constant 0 : index
    %c0_92 = arith.constant 0 : index
    %138 = vector.load %arg6[%c0_91, %c0_92] : memref<2x8xf32, #tpu.memory_space<vmem>>, vector<1x8xf32>
    %cst_93 = arith.constant 9.99999974E-6 : f32
    %139 = vector.broadcast %cst_93 : f32 to vector<1x8xf32>
    %140 = arith.addf %137, %139 : vector<1x8xf32>
    %141 = math.rsqrt %140 : vector<1x8xf32>
    %142 = arith.mulf %138, %141 : vector<1x8xf32>
    %c1_94 = arith.constant 1 : index
    %c0_95 = arith.constant 0 : index
    %143 = vector.load %arg6[%c1_94, %c0_95] : memref<2x8xf32, #tpu.memory_space<vmem>>, vector<1x8xf32>
    %144 = arith.mulf %132, %142 : vector<1x8xf32>
    %145 = arith.subf %143, %144 : vector<1x8xf32>
    %146 = tpu.concatenate %142, %145 in 0 : vector<1x8xf32>, vector<1x8xf32> -> vector<2x8xf32>
    %c0_96 = arith.constant 0 : index
    %c0_97 = arith.constant 0 : index
    %147 = vector.load %arg9[%c0_96, %c0_97] : memref<8x128xf32, #tpu.memory_space<vmem>>, vector<8x128xf32>
    %cst_98 = arith.constant dense<0.000000e+00> : vector<2x128xf32>
    %148 = tpu.matmul %146, %147, %cst_98 {dimension_numbers = #tpu.dot_dimension_numbers<[1], [0], [0], [1], [0, 0, 1, 1], [], []>} : vector<2x8xf32>, vector<8x128xf32>, vector<2x128xf32> -> vector<2x128xf32>
    %149 = vector.extract_strided_slice %148 {offsets = [0, 0], sizes = [1, 128], strides = [1, 1]} : vector<2x128xf32> to vector<1x128xf32>
    %150 = vector.broadcast %149 : vector<1x128xf32> to vector<32x128xf32>
    %151 = arith.mulf %121, %150 : vector<32x128xf32>
    %152 = vector.extract_strided_slice %148 {offsets = [1, 0], sizes = [1, 128], strides = [1, 1]} : vector<2x128xf32> to vector<1x128xf32>
    %153 = vector.broadcast %152 : vector<1x128xf32> to vector<32x128xf32>
    %154 = arith.addf %151, %153 : vector<32x128xf32>
    %155 = arith.addf %154, %91 : vector<32x128xf32>
    %cst_99 = arith.constant 0.000000e+00 : f32
    %156 = vector.broadcast %cst_99 : f32 to vector<32x128xf32>
    %157 = arith.maximumf %155, %156 : vector<32x128xf32>
    %c0_100 = arith.constant 0 : index
    %c0_101 = arith.constant 0 : index
    %158 = vector.load %arg10[%c0_100, %c0_101] : memref<32x128xf32, #tpu.memory_space<vmem>>, vector<32x128xf32>
    tpu.vector_store %arg10[%c0_100, %c0_101], %157 {strides = array<i32>} : memref<32x128xf32, #tpu.memory_space<vmem>>, vector<32x128xf32>,
    return
  }
}

</mosaic_0001>

<bundles_post_ra>
// kernel: tpu_custom_call.1
= control target key start
LH: loop header
LB: loop body
LE: loop exit
PB: predicated region body
PF: predicated region fallthrough
CT: control target
= control target key end

     0   :  { %15 = vsyncpa [#allocation4], 0  ;;  %s1921_s0 = inlined_call_operand.vmem [shape: bf16[2,18,64], index: 0, kind: input, shape index: {}]   ;;  %s1922_s1 = inlined_call_operand.hbm [shape: bf16[3,64,256], index: 1, kind: input, shape index: {}]   ;;  %s1923_s2 = inlined_call_operand.hbm [shape: bf16[3,128,128], index: 2, kind: input, shape index: {}]   ;;  %s1924_s3 = inlined_call_operand.vmem [shape: f32[1,256], index: 3, kind: input, shape index: {}]   ;;  %s1925_s4 = inlined_call_operand.vmem [shape: f32[1,128], index: 4, kind: input, shape index: {}]   ;;  %s1926_s5 = inlined_call_operand.vmem [shape: f32[2,8], index: 5, kind: input, shape index: {}]   ;;  %s1927_s6 = inlined_call_operand.vmem [shape: f32[2,8], index: 6, kind: input, shape index: {}]   ;;  %s1928_s7 = inlined_call_operand.vmem [shape: f32[2,8], index: 7, kind: input, shape index: {}]   ;;  %s1929_s8 = inlined_call_operand.vmem [shape: f32[128,8], index: 8, kind: input, shape index: {}]   ;;  %s1930_s9 = inlined_call_operand.vmem [shape: f32[8,128], index: 9, kind: input, shape index: {}]   ;;  %s1931_s10 = inlined_call_operand.hbm [shape: f32[32,128], index: 10, kind: output, shape index: {}]  }
   0x1   :  { %16 = vsyncpa [#allocation7], 0 }
   0x2   :  { %17 = vsyncpa [#allocation5], 0  ;;  %s24_s15 = sshll.u32 %s1922_s1, 4  ;;  %s1508_s16 = smov [#allocation3]   ;;  %s25_s15 = int_to_ptr.hbm [resolvable:$true] %s24_s15 }
   0x3   :  { %s26_s17 = sshll.u32 %s1508_s16, 4  ;;  %s37_s20 = sshll.u32 %s1923_s2, 4  ;;  %s27_s17 = int_to_ptr.vmem [resolvable:$true] %s26_s17  ;;  %s38_s20 = int_to_ptr.hbm [resolvable:$true] %s37_s20 }
   0x4   :  { %s1509_s21 = smov 128   ;;  %s1510_s22 = smov 8  }
   0x5   :  { %32 = dma.hbm_to_vmem [thread:$0]  %s25_s15, 3072, %s27_s17, [#allocation4], %s1509_s21, %s1509_s21, %s1510_s22  }
   0x6   :  { %s1511_s23 = smov [#allocation6]   ;;  %s1512_s25 = smov 64  }
   0x7   :  { %s39_s24 = sshll.u32 %s1511_s23, 4  ;;  %s1513_s1 = smov 4   ;;  %s40_s24 = int_to_ptr.vmem [resolvable:$true] %s39_s24 }
   0x8   :  { %45 = dma.hbm_to_vmem [thread:$0]  %s38_s20, 3072, %s40_s24, [#allocation7], %s1512_s25, %s1512_s25, %s1513_s1  }
   0x9   :  { %1502 = dma.done.wait [#allocation4], 3072  }
   0xa   :  { %1503 = vsyncadd [#allocation4], 4294964224 }
   0xb   :  { %1504 = dma.done.wait [#allocation7], 3072  }
   0xc   :  { %1505 = vsyncadd [#allocation7], 4294964224  ;;  %v1174_v0 = vld [vmem:[#allocation3 + $0x70] sm:$0xf]  ;;  %v1382_v1 = vld [vmem:[#allocation3 + $0x74] sm:$0xf0] }
   0xd   :  { %v1381_v2 = vld [vmem:[#allocation3 + $0x74] sm:$0xf]  ;;  %v1175_v3 = vor.u32 %v1382_v1, %v1174_v0  ;;  %v1176_v4 = vld [vmem:[#allocation3 + $0x78] sm:$0xf0]  ;;  %v1218_v5 = vld [vmem:[#allocation3 + $0x30] sm:$0xf] }
   0xe   :  { %v1374_v6 = vld [vmem:[#allocation3 + $0x34] sm:$0xf0]  ;;  %vm83_vm0 = vsmask.f32 3328  ;;  %v1179_v7 = vor.u32 %v1381_v2, %v1176_v4  ;;  %v1166_v9 = vld [vmem:[#allocation3 + $0x60] sm:$0xf] }
   0xf   :  { %v1219_v8 = vor.u32 %v1374_v6, %v1218_v5  ;;  %v1380_v10 = vld [vmem:[#allocation3 + $0x64] sm:$0xf0]  ;;  %v1379_v11 = vld [vmem:[#allocation3 + $0x64] sm:$0xf]  ;;  %200 = vmatpush.bf16.msra.mxu0 %v1175_v3  ;;  %v1168_v13 = vld [vmem:[#allocation3 + $0x68] sm:$0xf0] }
  0x10   :  { %v1167_v12 = vor.u32 %v1380_v10, %v1166_v9  ;;  %v1210_v14 = vld [vmem:[#allocation3 + $0x20] sm:$0xf]  ;;  %v1372_v15 = vld [vmem:[#allocation3 + $0x24] sm:$0xf0]  ;;  %219 = vmatpush.bf16.msra.mxu1 %v1179_v7  ;;  %v1171_v16 = vor.u32 %v1379_v11, %v1168_v13  ;;  %v1158_v18 = vld [vmem:[#allocation3 + $0x50] sm:$0xf] }
  0x11   :  { %294 = vmatpush.bf16.msra.mxu2 %v1219_v8  ;;  %v1211_v17 = vor.u32 %v1372_v15, %v1210_v14  ;;  %v1378_v19 = vld [vmem:[#allocation3 + $0x54] sm:$0xf0]  ;;  %v1377_v20 = vld [vmem:[#allocation3 + $0x54] sm:$0xf]  ;;  %v1160_v21 = vld [vmem:[#allocation3 + $0x58] sm:$0xf0] }
  0x12   :  { %v1202_v22 = vld [vmem:[#allocation3 + $0x10] sm:$0xf]  ;;  %v1370_v23 = vld [vmem:[#allocation3 + $0x14] sm:$0xf0]  ;;  %v1150_v24 = vld [vmem:[#allocation3 + $0x40] sm:$0xf]  ;;  %v1159_v26 = vor.u32 %v1378_v19, %v1158_v18  ;;  %v1163_v30 = vor.u32 %v1377_v20, %v1160_v21 }
  0x13   :  { %v1376_v25 = vld [vmem:[#allocation3 + $0x44] sm:$0xf0]  ;;  %vm84_vm1 = vsmask.f32 7440  ;;  %201 = vmatpush.bf16.msra.mxu0 %v1167_v12  ;;  %v1375_v27 = vld [vmem:[#allocation3 + $0x44] sm:$0xf]  ;;  %v1203_v31 = vor.u32 %v1370_v23, %v1202_v22 }
  0x14   :  { %v1152_v28 = vld [vmem:[#allocation3 + $0x48] sm:$0xf0]  ;;  %v1194_v29 = vld [vmem:[#allocation3] sm:$0xf]  ;;  %220 = vmatpush.bf16.msra.mxu1 %v1171_v16  ;;  %v69_v32 = vld [vmem:[%s1921_s0] sm:$0xf]  ;;  %v1151_v40 = vor.u32 %v1376_v25, %v1150_v24 }
  0x15   :  { %295 = vmatpush.bf16.msra.mxu2 %v1211_v17  ;;  %v1586_v33 = vld [vmem:[%s1921_s0 + $0x4] sm:$0xf]  ;;  %v1591_v34 = vld [vmem:[%s1921_s0 + $0x8] sm:$0x1]  ;;  %v1368_v35 = vld [vmem:[#allocation3 + $0x4] sm:$0xf0]  ;;  %v1155_v49 = vor.u32 %v1375_v27, %v1152_v28 }
  0x16   :  { %v87_v36 = vshrl.u32 %v69_v32, 16  ;;  %v90_v37 = vshll.u32 %v69_v32, 16  ;;  %v96_v38 = vshll.u32 %v1586_v33, 16  ;;  %v100_v39 = vshrl.u32 %v1586_v33, 16  ;;  %v1256_v42 = vld [vmem:[#allocation3 + $0xb0] sm:$0xf]  ;;  %vm1598_vm2 = vmor %vm83_vm0, %vm84_vm1 }
  0x17   :  { %v106_v41 = vshll.u32 %v1591_v34, 16  ;;  %v1390_v43 = vld [vmem:[#allocation3 + $0xb4] sm:$0xf0]  ;;  %202 = vmatpush.bf16.msra.mxu0 %v1159_v26  ;;  %v1248_v48 = vld [vmem:[#allocation3 + $0xa0] sm:$0xf]  ;;  %v1195_v50 = vor.u32 %v1368_v35, %v1194_v29  ;;  %vm189_vm3 = vcmask 523264  }
  0x18   :  { %v89_v44 = vrot.slane %v87_v36, 4  ;;  %v92_v45 = vrot.slane %v90_v37, 5  ;;  %v98_v46 = vrot.slane %v96_v38, 5  ;;  %v102_v47 = vrot.slane %v100_v39, 4  ;;  %221 = vmatpush.bf16.msra.mxu1 %v1163_v30  ;;  %v1388_v53 = vld [vmem:[#allocation3 + $0xa4] sm:$0xf0] }
  0x19   :  { %296 = vmatpush.bf16.msra.mxu2 %v1203_v31  ;;  %v108_v52 = vrot.slane %v106_v41, 5  ;;  %v1373_v54 = vld [vmem:[#allocation3 + $0x34] sm:$0xf]  ;;  %v1257_v57 = vor.u32 %v1390_v43, %v1256_v42  ;;  %v1220_v58 = vld [vmem:[#allocation3 + $0x38] sm:$0xf0]  ;;  %v1249_v6 = vor.u32 %v1388_v53, %v1248_v48  ;;  %v339_v51 = vrot.slane %v1586_v33, 5 }
  0x1a   :  { %v93_v55 = vor.u32 %v92_v45, %v89_v44  ;;  %v103_v56 = vor.u32 %v102_v47, %v98_v46  ;;  %v1371_v59 = vld [vmem:[#allocation3 + $0x24] sm:$0xf]  ;;  %v1212_v60 = vld [vmem:[#allocation3 + $0x28] sm:$0xf0]  ;;  %v1605_v61 = vld [vmem:[%s1921_s0] sm:$0xff]  ;;  %v1223_v62 = vor.u32 %v1373_v54, %v1220_v58  ;;  %vm334_vm4 = vcmask 1042432  }
  0x1b   :  { %v71_v63 = vld [vmem:[%s1921_s0 + $0xc] sm:$0xf]  ;;  %v1613_v0 = vld [vmem:[%s1921_s0 + $0x10] sm:$0xf]  ;;  %203 = vmatpush.bf16.msra.mxu0 %v1151_v40  ;;  %v1618_v3 = vld [vmem:[%s1921_s0 + $0x14] sm:$0x1]  ;;  %v1215_v7 = vor.u32 %v1371_v59, %v1212_v60 }
  0x1c   :  { %v94_v1 = vrot.slane %v93_v55, 4  ;;  %v104_v2 = vrot.slane %v103_v56, 4  ;;  %v111_v4 = vshrl.u32 %v71_v63, 16  ;;  %v114_v5 = vshll.u32 %v71_v63, 16  ;;  %222 = vmatpush.bf16.msra.mxu1 %v1155_v49  ;;  %v1240_v10 = vld [vmem:[#allocation3 + $0x90] sm:$0xf]  ;;  %313 = vmatpush.bf16.msra.mxu3 %v1223_v62 }
  0x1d   :  { %297 = vmatpush.bf16.msra.mxu2 %v1195_v50  ;;  %v120_v8 = vshll.u32 %v1613_v0, 16  ;;  %v124_v9 = vshrl.u32 %v1613_v0, 16  ;;  %v1386_v11 = vld [vmem:[#allocation3 + $0x94] sm:$0xf0]  ;;  %v1369_v16 = vld [vmem:[#allocation3 + $0x14] sm:$0xf] }
  0x1e   :  { %v99_v12 = vsel %vm1598_vm2, %v94_v1, %v98_v46  ;;  %v109_v13 = vsel %vm1598_vm2, %v104_v2, %v108_v52  ;;  %v113_v14 = vrot.slane %v111_v4, 4  ;;  %v116_v15 = vrot.slane %v114_v5, 5  ;;  %v1204_v17 = vld [vmem:[#allocation3 + $0x18] sm:$0xf0]  ;;  %v1389_v22 = vld [vmem:[#allocation3 + $0xb4] sm:$0xf] }
  0x1f   :  { %416 = vmatpush.bf16.msrb.mxu0 %v1257_v57  ;;  %v143_v18 = vunpack.c.l.b16 %v99_v12  ;;  %v144_v19 = vunpack.c.l.b16 %v109_v13  ;;  %v122_v20 = vrot.slane %v120_v8, 5  ;;  %v126_v21 = vrot.slane %v124_v9, 4  ;;  %v1258_v23 = vld [vmem:[#allocation3 + $0xb8] sm:$0xf0]  ;;  %v1387_v29 = vld [vmem:[#allocation3 + $0xa4] sm:$0xf] }
  0x20   :  { %1224 = vmatmul.msk.bf16.vlgmr.msra.gmra.mxu2 %vm189_vm3, %v1605_v61  ;;  %v117_v24 = vor.u32 %v116_v15, %v113_v14  ;;  %v130_v25 = vshll.u32 %v1618_v3, 16  ;;  %v1261_v28 = vor.u32 %v1389_v22, %v1258_v23  ;;  %v1250_v30 = vld [vmem:[#allocation3 + $0xa8] sm:$0xf0]  ;;  %314 = vmatpush.bf16.msra.mxu3 %v1215_v7  ;;  %v1241_v31 = vor.u32 %v1386_v11, %v1240_v10  ;;  %v1367_v35 = vld [vmem:[#allocation3 + $0x4] sm:$0xf]  ;;  %v1366_v55 = vld [vmem:[%s1921_s0 + $0xc] sm:$0xff] }
  0x21   :  { %v147_v26 = vpack.c.b16 %v144_v19, %v143_v18  ;;  %v127_v27 = vor.u32 %v126_v21, %v122_v20  ;;  %v1207_v32 = vor.u32 %v1369_v16, %v1204_v17  ;;  %v1196_v36 = vld [vmem:[#allocation3 + $0x8] sm:$0xf0]  ;;  %v1232_v37 = vld [vmem:[#allocation3 + $0x80] sm:$0xf]  ;;  %v1384_v38 = vld [vmem:[#allocation3 + $0x84] sm:$0xf0]  ;;  %v1253_v42 = vor.u32 %v1387_v29, %v1250_v30 }
  0x22   :  { %v118_v39 = vrot.slane %v117_v24, 4  ;;  %v132_v41 = vrot.slane %v130_v25, 5  ;;  %435 = vmatpush.bf16.msrb.mxu1 %v1261_v28  ;;  %v1385_v43 = vld [vmem:[#allocation3 + $0x94] sm:$0xf]  ;;  %v1242_v44 = vld [vmem:[#allocation3 + $0x98] sm:$0xf0]  ;;  %v1199_v45 = vor.u32 %v1367_v35, %v1196_v36  ;;  %v1233_v46 = vor.u32 %v1384_v38, %v1232_v37 }
  0x23   :  { %417 = vmatpush.bf16.msrb.mxu0 %v1249_v6  ;;  %1182 = vmatmul.msk.bf16.vlgmr.msra.gmra.mxu1 %vm189_vm3, %v147_v26  ;;  %v128_v40 = vrot.slane %v127_v27, 4  ;;  %v1245_v49 = vor.u32 %v1385_v43, %v1242_v44  ;;  %v1383_v50 = vld [vmem:[#allocation3 + $0x84] sm:$0xf]  ;;  %v1234_v52 = vld [vmem:[#allocation3 + $0x88] sm:$0xf0]  ;;  %vm335_vm5 = vcmask 1046532  }
  0x24   :  { %1180 = vmatmul.msk.bf16.vlgmr.msra.gmra.mxu0 %vm189_vm3, %v147_v26  ;;  %315 = vmatpush.bf16.msra.mxu3 %v1207_v32  ;;  %v123_v47 = vsel %vm1598_vm2, %v118_v39, %v122_v20  ;;  %v1237_v56 = vor.u32 %v1383_v50, %v1234_v52  ;;  %v328_v58 = vld [vmem:[%s1921_s0] sm:$0xe]  ;;  %v342_v59 = vrot.slane %v1591_v34, 5  ;;  %vm336_vm6 = vmor %vm334_vm4, %vm335_vm5  ;;  %v346_v4 = vrot.slane %v1613_v0, 5  ;;  %v329_v5 = vld [vmem:[%s1921_s0 + $0xc] sm:$0xe] }
  0x25   :  { %v133_v48 = vsel %vm1598_vm2, %v128_v40, %v132_v41  ;;  %v145_v53 = vunpack.c.l.b16 %v123_v47  ;;  %v1228_v60 = vrot.slane %v328_v58, 9  ;;  %v1229_v34 = vrot.slane %v329_v5, 9  ;;  %v1665_v16 = vld [vmem:[%s1929_s8 + $0x78] sm:$0xff]  ;;  %v1676_v18 = vld [vmem:[%s1929_s8 + $0x70] sm:$0xff]  ;;  %v1683_v19 = vld [vmem:[%s1929_s8 + $0x68] sm:$0xff]  ;;  %s1134_s29 = sshll.u32 %s1931_s10, 4  ;;  %s1135_s29 = int_to_ptr.hbm [resolvable:$true] %s1134_s29 }
  0x26   :  { %436 = vmatpush.bf16.msrb.mxu1 %v1253_v42  ;;  %v146_v54 = vunpack.c.l.b16 %v133_v48  ;;  %v348_v6 = vrot.slane %v346_v4, 4  ;;  %v349_v7 = vrot.slane %v1618_v3, 5  ;;  %512 = vmatpush.msrb.mxu2 %v1665_v16  ;;  %v1690_v21 = vld [vmem:[%s1929_s8 + $0x60] sm:$0xff]  ;;  %v1697_v23 = vld [vmem:[%s1929_s8 + $0x58] sm:$0xff]  ;;  %v1708_v26 = vld [vmem:[%s1929_s8 + $0x50] sm:$0xff]  ;;  %vm494_vm7 = vcmask 1040384  }
  0x27   :  { %418 = vmatpush.bf16.msrb.mxu0 %v1241_v31  ;;  %v340_v62 = vsel %vm336_vm6, %v1228_v60, %v339_v51  ;;  %v347_v8 = vsel %vm336_vm6, %v1229_v34, %v346_v4  ;;  %v1715_v27 = vld [vmem:[%s1929_s8 + $0x48] sm:$0xff]  ;;  %v1722_v28 = vld [vmem:[%s1929_s8 + $0x40] sm:$0xff]  ;;  %v1729_v30 = vld [vmem:[%s1929_s8 + $0x38] sm:$0xff]  ;;  %vm562_vm14 = vcmask 64512  }
  0x28   :  { %316 = vmatpush.bf16.msra.mxu3 %v1199_v45  ;;  %v148_v57 = vpack.c.b16 %v146_v54, %v145_v53  ;;  %v360_v1 = vunpack.c.l.b16 %v340_v62  ;;  %v350_v9 = vsel %vm336_vm6, %v348_v6, %v349_v7  ;;  %v362_v10 = vunpack.c.l.b16 %v347_v8  ;;  %513 = vmatpush.msrb.mxu2 %v1676_v18  ;;  %v1736_v36 = vld [vmem:[%s1929_s8 + $0x30] sm:$0xff]  ;;  %v1743_v37 = vld [vmem:[%s1929_s8 + $0x28] sm:$0xff]  ;;  %v1750_v38 = vld [vmem:[%s1929_s8 + $0x20] sm:$0xff] }
  0x29   :  { %v363_v11 = vunpack.c.l.b16 %v350_v9  ;;  %v1755_v39 = vld [vmem:[%s1929_s8 + $0x18] sm:$0xff]  ;;  %v1762_v40 = vld [vmem:[%s1929_s8 + $0x10] sm:$0xff]  ;;  %v458_v48 = vld [vmem:[%s1924_s3] sm:$0x3] }
  0x2a   :  { %437 = vmatpush.bf16.msrb.mxu1 %v1245_v49  ;;  %514 = vmatpush.msrb.mxu2 %v1683_v19  ;;  %v1779_v49 = vld [vmem:[%s1929_s8] sm:$0xff]  ;;  %v461_v52 = vperm.slane %v458_v48, 1 }
  0x2b   :  { %419 = vmatpush.bf16.msrb.mxu0 %v1233_v46  ;;  %1226 = vmatmul.msk.bf16.vlgmr.msra.gmra.mxu3 %vm189_vm3, %v1605_v61  ;;  %v341_v61 = vrot.slane %v339_v51, 4  ;;  %v365_v12 = vpack.c.b16 %v363_v11, %v362_v10  ;;  %v1769_v46 = vld [vmem:[%s1929_s8 + $0x8] sm:$0xff] }
  0x2c   :  { %515 = vmatpush.msrb.mxu2 %v1690_v21 }
  0x2d   :  { %v343_v63 = vsel %vm336_vm6, %v341_v61, %v342_v59  ;;  %v460_v61 = vperm.slane %v458_v48, 0 }
  0x2e   :  { %438 = vmatpush.bf16.msrb.mxu1 %v1237_v56  ;;  %v361_v2 = vunpack.c.l.b16 %v343_v63  ;;  %516 = vmatpush.msrb.mxu2 %v1697_v23 }
  0x2f   :  { %623 = vmatpush.msra.mxu0 %v1665_v16 }
  0x30   :  { %1225 = vmatmul.msk.bf16.gmra.mxu2 %vm189_vm3, %v1366_v55  ;;  %v364_v33 = vpack.c.b16 %v361_v2, %v360_v1 }
  0x31   :  { %624 = vmatpush.msra.mxu0 %v1676_v18  ;;  %517 = vmatpush.msrb.mxu2 %v1708_v26 }
  0x33   :  { %1183 = vmatmul.msk.bf16.gmra.mxu1 %vm189_vm3, %v148_v57  ;;  %625 = vmatpush.msra.mxu0 %v1683_v19 }
  0x34   :  { %1181 = vmatmul.msk.bf16.gmra.mxu0 %vm189_vm3, %v148_v57  ;;  %518 = vmatpush.msrb.mxu2 %v1715_v27 }
  0x35   :  { %626 = vmatpush.msra.mxu0 %v1690_v21 }
  0x36   :  { %519 = vmatpush.msrb.mxu2 %v1722_v28 }
  0x37   :  { %627 = vmatpush.msra.mxu0 %v1697_v23 }
  0x38   :  { %520 = vmatpush.msrb.mxu2 %v1729_v30 }
  0x39   :  { %628 = vmatpush.msra.mxu0 %v1708_v26 }
  0x3a   :  { %521 = vmatpush.msrb.mxu2 %v1736_v36 }
  0x3b   :  { %1227 = vmatmul.msk.bf16.gmra.mxu3 %vm189_vm3, %v1366_v55  ;;  %629 = vmatpush.msra.mxu0 %v1715_v27 }
  0x3c   :  { %522 = vmatpush.msrb.mxu2 %v1743_v37 }
  0x3d   :  { %630 = vmatpush.msra.mxu0 %v1722_v28 }
  0x3e   :  { %523 = vmatpush.msrb.mxu2 %v1750_v38 }
  0x3f   :  { %631 = vmatpush.msra.mxu0 %v1729_v30 }
  0x40   :  { %524 = vmatpush.msrb.mxu2 %v1755_v39 }
  0x41   :  { %632 = vmatpush.msra.mxu0 %v1736_v36 }
  0x42   :  { %525 = vmatpush.msrb.mxu2 %v1762_v40 }
  0x43   :  { %1264 = vmatmul.msk.bf16.vlgmr.msrb.gmra.mxu1 %vm189_vm3, %v364_v33  ;;  %633 = vmatpush.msra.mxu0 %v1743_v37 }
  0x44   :  { %1262 = vmatmul.msk.bf16.vlgmr.msrb.gmra.mxu0 %vm189_vm3, %v364_v33  ;;  %526 = vmatpush.msrb.mxu2 %v1769_v46 }
  0x45   :  { %634 = vmatpush.msra.mxu0 %v1750_v38 }
  0x46   :  { %527 = vmatpush.msrb.mxu2 %v1779_v49 }
  0x47   :  { %635 = vmatpush.msra.mxu0 %v1755_v39 }
  0x49   :  { %636 = vmatpush.msra.mxu0 %v1762_v40 }
  0x4b   :  { %637 = vmatpush.msra.mxu0 %v1769_v46 }
  0x4d   :  { %638 = vmatpush.msra.mxu0 %v1779_v49 }
  0x4f   :  { %1033 = vmatpush.msrb.mxu0 %v1665_v16 }
  0x51   :  { %1034 = vmatpush.msrb.mxu0 %v1676_v18 }
  0x53   :  { %1265 = vmatmul.msk.bf16.gmra.mxu1 %vm189_vm3, %v365_v12  ;;  %1035 = vmatpush.msrb.mxu0 %v1683_v19 }
  0x54   :  { %1263 = vmatmul.msk.bf16.gmra.mxu0 %vm189_vm3, %v365_v12 }
  0x55   :  { %1036 = vmatpush.msrb.mxu0 %v1690_v21 }
  0x57   :  { %1037 = vmatpush.msrb.mxu0 %v1697_v23 }
  0x59   :  { %1038 = vmatpush.msrb.mxu0 %v1708_v26 }
  0x5b   :  { %1039 = vmatpush.msrb.mxu0 %v1715_v27 }
  0x5d   :  { %1040 = vmatpush.msrb.mxu0 %v1722_v28 }
  0x5f   :  { %1041 = vmatpush.msrb.mxu0 %v1729_v30 }
  0x61   :  { %1042 = vmatpush.msrb.mxu0 %v1736_v36 }
  0x63   :  { %1043 = vmatpush.msrb.mxu0 %v1743_v37 }
  0x65   :  { %1044 = vmatpush.msrb.mxu0 %v1750_v38 }
  0x67   :  { %1045 = vmatpush.msrb.mxu0 %v1755_v39 }
  0x69   :  { %1046 = vmatpush.msrb.mxu0 %v1762_v40  ;;  %v1852_v40 = vld [vmem:[%s1930_s9] sm:$0xff] }
  0x6a   :  { %581 = vmatpush.msrb.mxu3 %v1852_v40  ;;  %690 = vmatpush.msra.mxu2 %v1852_v40 }
  0x6b   :  { %1047 = vmatpush.msrb.mxu0 %v1769_v46 }
  0x6d   :  { %1048 = vmatpush.msrb.mxu0 %v1779_v49 }
  0xa0   :  { %v224_v13 = vpop.f32.mrf.mxu1 }
  0xa1   :  { %v1658_v0 = vpop.f32.mrf.mxu0 }
  0xa3   :  { %v299_v22 = vpop.f32.mrf.mxu2 }
  0xa4   :  { %v300_v56 = vadd.f32 %v299_v22, %v1658_v0 }
  0xa8   :  { %v226_v15 = vpop.f32.mrf.mxu1 }
  0xa9   :  { %v1660_v14 = vpop.f32.mrf.mxu0 }
  0xab   :  { %v301_v31 = vpop.f32.mrf.mxu2 }
  0xac   :  { %v302_v54 = vadd.f32 %v301_v31, %v1660_v14 }
  0xae   :  { %v318_v20 = vpop.f32.mrf.mxu3 }
  0xaf   :  { %v319_v41 = vadd.f32 %v318_v20, %v224_v13 }
  0xb0   :  { %v1671_v17 = vpop.f32.mrf.mxu1 }
  0xb1   :  { %v1669_v3 = vpop.f32.mrf.mxu0 }
  0xb3   :  { %v304_v47 = vpop.f32.mrf.mxu2 }
  0xb4   :  { %v305_v51 = vadd.f32 %v304_v47, %v1669_v3 }
  0xb6   :  { %v320_v29 = vpop.f32.mrf.mxu3 }
  0xb7   :  { %v321_v42 = vadd.f32 %v320_v29, %v226_v15 }
  0xb8   :  { %v1703_v25 = vpop.f32.mrf.mxu1 }
  0xb9   :  { %v1701_v24 = vpop.f32.mrf.mxu0 }
  0xbb   :  { %v306_v7 = vpop.f32.mrf.mxu2 }
  0xbc   :  { %v307_v0 = vadd.f32 %v306_v7, %v1701_v24 }
  0xbe   :  { %v323_v43 = vpop.f32.mrf.mxu3 }
  0xbf   :  { %v324_v55 = vadd.f32 %v323_v43, %v1671_v17 }
  0xc0   :  { %v440_v35 = vpop.f32.mrf.mxu1 }
  0xc1   :  { %v421_v32 = vpop.f32.mrf.mxu0  ;;  %v451_v50 = vadd.f32 %v440_v35, %v319_v41 }
  0xc2   :  { %v450_v60 = vadd.f32 %v421_v32, %v300_v56 }
  0xc3   :  { %v1789_v58 = vadd.f32 %v461_v52, %v451_v50 }
  0xc4   :  { %v1804_v8 = vadd.f32 %v460_v61, %v450_v60 }
  0xc5   :  { %v609_v5 = vmul.f32 %v1789_v58, %v1789_v58 }
  0xc6   :  { %v325_v4 = vpop.f32.mrf.mxu3  ;;  %v481_v15 = vmul.f32 %v1804_v8, %v1804_v8 }
  0xc7   :  { %v326_v11 = vadd.f32 %v325_v4, %v1703_v25 }
  0xc8   :  { %v442_v45 = vpop.f32.mrf.mxu1 }
  0xc9   :  { %v423_v44 = vpop.f32.mrf.mxu0  ;;  %v453_v53 = vadd.f32 %v442_v45, %v321_v42 }
  0xca   :  { %v452_v57 = vadd.f32 %v423_v44, %v302_v54 }
  0xcb   :  { %v1791_v59 = vadd.f32 %v461_v52, %v453_v53 }
  0xcc   :  { %v1795_v33 = vadd.f32 %v460_v61, %v452_v57 }
  0xcd   :  { %v610_v34 = vmul.f32 %v1791_v59, %v1791_v59  ;;  %v600_v10 = vadd.f32 %v1791_v59, %v1789_v58 }
  0xce   :  { %v482_v12 = vmul.f32 %v1795_v33, %v1795_v33  ;;  %v472_v18 = vadd.f32 %v1795_v33, %v1804_v8 }
  0xcf   :  { %v613_v13 = vadd.f32 %v610_v34, %v609_v5 }
  0xd0   :  { %v445_v63 = vpop.f32.mrf.mxu1  ;;  %v485_v22 = vadd.f32 %v482_v12, %v481_v15  ;;  %v1406_v15 = vld [vmem:[#allocation6 + $0x78] sm:$0xff] }
  0xd1   :  { %v426_v62 = vpop.f32.mrf.mxu0  ;;  %v455_v2 = vadd.f32 %v445_v63, %v324_v55  ;;  %806 = vmatpush.bf16.msra.mxu1 %v1406_v15  ;;  %v1407_v15 = vld [vmem:[#allocation6 + $0x80] sm:$0xff] }
  0xd2   :  { %v454_v1 = vadd.f32 %v426_v62, %v305_v51 }
  0xd3   :  { %v1801_v6 = vadd.f32 %v461_v52, %v455_v2 }
  0xd4   :  { %v1806_v9 = vadd.f32 %v460_v61, %v454_v1 }
  0xd5   :  { %v611_v14 = vmul.f32 %v1801_v6, %v1801_v6  ;;  %v601_v19 = vadd.f32 %v600_v10, %v1801_v6 }
  0xd6   :  { %v483_v16 = vmul.f32 %v1806_v9, %v1806_v9  ;;  %v473_v23 = vadd.f32 %v472_v18, %v1806_v9  ;;  %v1405_v18 = vld [vmem:[#allocation6 + $0x70] sm:$0xff] }
  0xd7   :  { %v614_v24 = vadd.f32 %v613_v13, %v611_v14  ;;  %807 = vmatpush.bf16.msra.mxu1 %v1405_v18 }
  0xd8   :  { %v447_v17 = vpop.f32.mrf.mxu1  ;;  %v486_v31 = vadd.f32 %v485_v22, %v483_v16  ;;  %v1398_v16 = vld [vmem:[#allocation6 + $0x38] sm:$0xff] }
  0xd9   :  { %v428_v3 = vpop.f32.mrf.mxu0  ;;  %v457_v21 = vadd.f32 %v447_v17, %v326_v11  ;;  %873 = vmatpush.bf16.msra.mxu3 %v1398_v16 }
  0xda   :  { %v456_v20 = vadd.f32 %v428_v3, %v307_v0  ;;  %v1414_v3 = vld [vmem:[#allocation6 + $0xb8] sm:$0xff] }
  0xdb   :  { %v1829_v29 = vadd.f32 %v461_v52, %v457_v21  ;;  %v1413_v21 = vld [vmem:[#allocation6 + $0xb0] sm:$0xff] }
  0xdc   :  { %v1827_v25 = vadd.f32 %v460_v61, %v456_v20 }
  0xdd   :  { %v602_v41 = vadd.f32 %v601_v19, %v1829_v29  ;;  %v612_v26 = vmul.f32 %v1829_v29, %v1829_v29  ;;  %v1397_v19 = vld [vmem:[#allocation6 + $0x30] sm:$0xff] }
  0xde   :  { %v474_v32 = vadd.f32 %v473_v23, %v1827_v25  ;;  %v484_v35 = vmul.f32 %v1827_v25, %v1827_v25  ;;  %874 = vmatpush.bf16.msra.mxu3 %v1397_v19 }
  0xdf   :  { %v603_v44 = vrot.slane %v602_v41, 4  ;;  %v615_v45 = vadd.f32 %v614_v24, %v612_v26 }
  0xe0   :  { %v475_v42 = vrot.slane %v474_v32, 4  ;;  %v487_v43 = vadd.f32 %v486_v31, %v484_v35 }
  0xe1   :  { %v604_v48 = vadd.f32 %v603_v44, %v602_v41  ;;  %v616_v50 = vrot.slane %v615_v45, 4 }
  0xe2   :  { %v476_v27 = vadd.f32 %v475_v42, %v474_v32  ;;  %v488_v47 = vrot.slane %v487_v43, 4  ;;  %v649_v42 = vld [vmem:[%s1928_s7] sm:$0x1] }
  0xe3   :  { %v605_v52 = vrot.slane %v604_v48, 2  ;;  %v617_v53 = vadd.f32 %v616_v50, %v615_v45 }
  0xe4   :  { %v477_v54 = vrot.slane %v476_v27, 2  ;;  %v489_v55 = vadd.f32 %v488_v47, %v487_v43 }
  0xe5   :  { %v606_v57 = vadd.f32 %v605_v52, %v604_v48  ;;  %v618_v51 = vrot.slane %v617_v53, 2  ;;  %v665_v48 = vld [vmem:[%s1928_s7 + $0x1] sm:$0x1] }
  0xe6   :  { %v478_v56 = vadd.f32 %v477_v54, %v476_v27  ;;  %v490_v28 = vrot.slane %v489_v55, 2 }
  0xe7   :  { %v607_v61 = vrot.slane %v606_v57, 1  ;;  %v619_v62 = vadd.f32 %v618_v51, %v617_v53  ;;  %v538_v53 = vld [vmem:[%s1926_s5] sm:$0x1]  ;;  %v554_v51 = vld [vmem:[%s1926_s5 + $0x1] sm:$0x1] }
  0xe8   :  { %v479_v60 = vrot.slane %v478_v56, 1  ;;  %v491_v30 = vadd.f32 %v490_v28, %v489_v55 }
  0xe9   :  { %v608_v36 = vadd.f32 %v607_v61, %v606_v57  ;;  %v620_v1 = vrot.slane %v619_v62, 1 }
  0xea   :  { %v492_v63 = vrot.slane %v491_v30, 1  ;;  %v480_v2 = vadd.f32 %v479_v60, %v478_v56 }
  0xeb   :  { %v621_v4 = vadd.f32 %v620_v1, %v619_v62  ;;  %v1403_v1 = vld [vmem:[#allocation6 + $0x60] sm:$0xff] }
  0xec   :  { %v493_v37 = vadd.f32 %v492_v63, %v491_v30 }
  0xed   :  { %v622_v38 = vsel %vm494_vm7, %v608_v36, %v621_v4  ;;  %v1404_v36 = vld [vmem:[#allocation6 + $0x68] sm:$0xff]  ;;  %v1402_v4 = vld [vmem:[#allocation6 + $0x58] sm:$0xff] }
  0xee   :  { %v495_v5 = vsel %vm494_vm7, %v480_v2, %v493_v37  ;;  %639 = vmatmul.f32.vlgmr.msra.gmra.mxu0 %v622_v38  ;;  %808 = vmatpush.bf16.msra.mxu1 %v1404_v36  ;;  %v1396_v2 = vld [vmem:[#allocation6 + $0x28] sm:$0xff]  ;;  %v1411_v38 = vld [vmem:[#allocation6 + $0xa0] sm:$0xff] }
  0xef   :  { %528 = vmatmul.f32.vlgmr.msrb.gmra.mxu2 %v495_v5  ;;  %v1412_v37 = vld [vmem:[#allocation6 + $0xa8] sm:$0xff]  ;;  %875 = vmatpush.bf16.msra.mxu3 %v1396_v2  ;;  %v1395_v5 = vld [vmem:[#allocation6 + $0x20] sm:$0xff] }
  0xf0   :  { %963 = vmatpush.bf16.msrb.mxu2 %v1414_v3 }
  0xf2   :  { %809 = vmatpush.bf16.msra.mxu1 %v1403_v1 }
  0xf3   :  { %876 = vmatpush.bf16.msra.mxu3 %v1395_v5 }
  0xf4   :  { %964 = vmatpush.bf16.msrb.mxu2 %v1413_v21 }
  0xf6   :  { %810 = vmatpush.bf16.msra.mxu1 %v1402_v4 }
  0xf8   :  { %965 = vmatpush.bf16.msrb.mxu2 %v1412_v37  ;;  %v1423_v37 = vld [vmem:[%s1925_s4] ss:$0 sm:$0xff] }
  0xfc   :  { %966 = vmatpush.bf16.msrb.mxu2 %v1411_v38 }
 0x16b   :  { %v640_v39 = vpop.f32.mrf.mxu0 }
 0x16c   :  { %v643_v34 = vmul.f32 0.001953125, %v640_v39  ;;  %v1401_v39 = vld [vmem:[#allocation6 + $0x50] sm:$0xff] }
 0x16d   :  { %811 = vmatpush.bf16.msra.mxu1 %v1401_v39 }
 0x16e   :  { %v644_v7 = vmul.f32 %v643_v34, %v643_v34 }
 0x170   :  { %v646_v10 = vrot.slane %v644_v7, 7  ;;  %v1410_v7 = vld [vmem:[#allocation6 + $0x98] sm:$0xff] }
 0x171   :  { %967 = vmatpush.bf16.msrb.mxu2 %v1410_v7 }
 0x172   :  { %v529_v11 = vpop.f32.mrf.mxu2  ;;  %v648_v12 = vsub.f32 %v643_v34, %v646_v10  ;;  %v1400_v10 = vld [vmem:[#allocation6 + $0x48] sm:$0xff] }
 0x173   :  { %v532_v46 = vmul.f32 0.001953125, %v529_v11  ;;  %812 = vmatpush.bf16.msra.mxu1 %v1400_v10  ;;  %v1393_v11 = vld [vmem:[#allocation6 + $0x10] sm:$0xff] }
 0x174   :  { %v650_v0 = vadd.f32 1e-05, %v648_v12  ;;  %v1409_v12 = vld [vmem:[#allocation6 + $0x90] sm:$0xff] }
 0x175   :  { %v533_v49 = vmul.f32 %v532_v46, %v532_v46  ;;  %968 = vmatpush.bf16.msrb.mxu2 %v1409_v12 }
 0x176   :  { %1424 = vrsqrt.f32 %v650_v0  ;;  %vm657_vm8 = vweird.f32 %v650_v0 }
 0x177   :  { %v535_v13 = vrot.slane %v533_v49, 7  ;;  %v1408_v49 = vld [vmem:[#allocation6 + $0x88] sm:$0xff] }
 0x179   :  { %v537_v14 = vsub.f32 %v532_v46, %v535_v13  ;;  %v1514_v13 = vmov 0.0   ;;  %969 = vmatpush.bf16.msrb.mxu2 %v1408_v49 }
 0x17a   :  { %705 = vst [vmem:[#allocation2] sm:$0x1] %v1514_v13 }
 0x17b   :  { %v539_v17 = vadd.f32 1e-05, %v537_v14  ;;  %706 = vst [vmem:[#allocation2 + $0x18] sm:$0x1] %v1514_v13  ;;  %v1391_v14 = vld [vmem:[#allocation6] sm:$0xff] }
 0x17c   :  { %v1425_v20 = vpop.eup %1424  ;;  %707 = vst [vmem:[#allocation2 + $0x11] sm:$0x1] %v1514_v13 }
 0x17d   :  { %1426 = vrsqrt.f32 %v539_v17  ;;  %v652_v22 = vmul.f32 %v1425_v20, %v650_v0  ;;  %vm658_vm9 = vweird.f32 %v1425_v20  ;;  %vm546_vm12 = vweird.f32 %v539_v17  ;;  %v1392_v0 = vld [vmem:[#allocation6 + $0x8] sm:$0xff]  ;;  %708 = vst [vmem:[#allocation2 + $0x29] sm:$0x1] %v1514_v13  ;;  %970 = vmatpush.bf16.msrb.mxu2 %v1407_v15 }
 0x17e   :  { %vm659_vm10 = vmor %vm657_vm8, %vm658_vm9 }
 0x17f   :  { %v653_v23 = vmul.f32 %v1425_v20, %v652_v22 }
 0x181   :  { %v654_v24 = vmul.f32 0.5, %v653_v23 }
 0x183   :  { %v1427_v31 = vpop.eup %1426  ;;  %v655_v32 = vsub.f32 1.5, %v654_v24 }
 0x184   :  { %v541_v35 = vmul.f32 %v1427_v31, %v539_v17  ;;  %vm547_vm11 = vweird.f32 %v1427_v31 }
 0x185   :  { %v656_v41 = vmul.f32 %v1425_v20, %v655_v32  ;;  %vm548_vm13 = vmor %vm546_vm12, %vm547_vm11 }
 0x186   :  { %v542_v26 = vmul.f32 %v1427_v31, %v541_v35 }
 0x187   :  { %v660_v43 = vsel %vm659_vm10, %v1425_v20, %v656_v41 }
 0x188   :  { %v543_v44 = vmul.f32 0.5, %v542_v26  ;;  %v662_v45 = vrot.slane %v660_v43, 1 }
 0x18a   :  { %v544_v27 = vsub.f32 1.5, %v543_v44  ;;  %v664_v47 = vmul.f32 %v662_v45, %v649_v42 }
 0x18c   :  { %v545_v50 = vmul.f32 %v1427_v31, %v544_v27  ;;  %v666_v52 = vmul.f32 %v664_v47, %v643_v34  ;;  %v1394_v34 = vld [vmem:[#allocation6 + $0x18] sm:$0xff] }
 0x18d   :  { %877 = vmatpush.bf16.msra.mxu3 %v1394_v34 }
 0x18e   :  { %v549_v54 = vsel %vm548_vm13, %v1427_v31, %v545_v50  ;;  %v667_v55 = vsub.f32 %v665_v48, %v666_v52 }
 0x18f   :  { %v551_v56 = vrot.slane %v549_v54, 1 }
 0x190   :  { %v669_v28 = vrot.slane %v667_v55, 7 }
 0x191   :  { %v553_v57 = vmul.f32 %v551_v56, %v538_v53  ;;  %878 = vmatpush.bf16.msra.mxu3 %v1393_v11 }
 0x192   :  { %v671_v30 = vsel %vm494_vm7, %v664_v47, %v669_v28 }
 0x193   :  { %v555_v60 = vmul.f32 %v553_v57, %v532_v46  ;;  %1267 = vmatmul.msk.f32.vlgmr.msra.gmra.mxu2 %vm562_vm14, %v671_v30  ;;  %v1399_v46 = vld [vmem:[#allocation6 + $0x40] sm:$0xff] }
 0x194   :  { %813 = vmatpush.bf16.msra.mxu1 %v1399_v46 }
 0x195   :  { %v556_v61 = vsub.f32 %v554_v51, %v555_v60  ;;  %879 = vmatpush.bf16.msra.mxu3 %v1392_v0 }
 0x197   :  { %v558_v62 = vrot.slane %v556_v61, 7 }
 0x198   :  { %1101 = vmatpush.msrb.mxu1 %v1852_v40 }
 0x199   :  { %v560_v63 = vsel %vm494_vm7, %v553_v57, %v558_v62  ;;  %880 = vmatpush.bf16.msra.mxu3 %v1391_v14 }
 0x19a   :  { %1266 = vmatmul.msk.f32.vlgmr.msrb.gmra.mxu3 %vm562_vm14, %v560_v63 }
 0x216   :  { %v1877_v53 = vpop.f32.mrf.mxu2 }
 0x21d   :  { %v583_v16 = vpop.f32.mrf.mxu3 }
 0x21e   :  { %v586_v3 = vperm.slane %v583_v16, 0  ;;  %v591_v17 = vperm.slane %v583_v16, 1 }
 0x220   :  { %v587_v18 = vmul.f32 %v586_v3, %v1804_v8  ;;  %v588_v19 = vmul.f32 %v586_v3, %v1795_v33  ;;  %v589_v20 = vmul.f32 %v586_v3, %v1806_v9  ;;  %v590_v21 = vmul.f32 %v586_v3, %v1827_v25 }
 0x222   :  { %v592_v40 = vadd.f32 %v591_v17, %v587_v18  ;;  %v593_v22 = vadd.f32 %v591_v17, %v588_v19  ;;  %v594_v23 = vadd.f32 %v591_v17, %v589_v20  ;;  %v595_v24 = vadd.f32 %v591_v17, %v590_v21 }
 0x224   :  { %v596_v31 = vmax.f32 %v592_v40, 0.0  ;;  %v597_v32 = vmax.f32 %v593_v22, 0.0  ;;  %v598_v35 = vmax.f32 %v594_v23, 0.0  ;;  %v599_v41 = vmax.f32 %v595_v24, 0.0 }
 0x226   :  { %709 = vst [vmem:[#allocation2 + $0x1] sm:$0xff] %v596_v31  ;;  %v739_v26 = vpack.c.bf16 %v597_v32, %v596_v31  ;;  %v740_v44 = vpack.c.bf16 %v599_v41, %v598_v35 }
 0x227   :  { %710 = vst [vmem:[#allocation2 + $0x9] sm:$0xff] %v597_v32 }
 0x228   :  { %711 = vst [vmem:[#allocation2 + $0x19] sm:$0xff] %v598_v35  ;;  %814 = vmatmul.bf16.vlgmr.msra.gmra.mxu1 %v739_v26 }
 0x229   :  { %712 = vst [vmem:[#allocation2 + $0x21] sm:$0xff] %v599_v41 }
 0x22d   :  { %v713_v8 = vld [vmem:[#allocation2] sm:$0xff] }
 0x22e   :  { %v714_v33 = vld [vmem:[#allocation2 + $0x8] sm:$0xff] }
 0x22f   :  { %v892_v42 = vld [vmem:[#allocation2 + $0x2] sm:$0xff]  ;;  %v893_v9 = vld [vmem:[#allocation2 + $0xa] sm:$0xff]  ;;  %v717_v43 = vpack.c.bf16 %v714_v33, %v713_v8  ;;  %v715_v45 = vld [vmem:[#allocation2 + $0x18] sm:$0xff] }
 0x230   :  { %v896_v25 = vpack.c.bf16 %v893_v9, %v892_v42  ;;  %v716_v27 = vld [vmem:[#allocation2 + $0x20] sm:$0xff] }
 0x231   :  { %881 = vmatmul.bf16.vlgmr.msra.gmra.mxu3 %v717_v43  ;;  %v894_v47 = vld [vmem:[#allocation2 + $0x1a] sm:$0xff]  ;;  %v895_v48 = vld [vmem:[#allocation2 + $0x22] sm:$0xff]  ;;  %v718_v50 = vpack.c.bf16 %v716_v27, %v715_v45 }
 0x232   :  { %971 = vmatmul.bf16.vlgmr.msrb.gmra.mxu2 %v896_v25  ;;  %v897_v52 = vpack.c.bf16 %v895_v48, %v894_v47 }
 0x238   :  { %819 = vmatmul.bf16.gmra.mxu1 %v740_v44 }
 0x241   :  { %886 = vmatmul.bf16.gmra.mxu3 %v718_v50 }
 0x242   :  { %976 = vmatmul.bf16.gmra.mxu2 %v897_v52 }
 0x2a5   :  { %v815_v54 = vpop.f32.mrf.mxu1 }
 0x2ad   :  { %v817_v28 = vpop.f32.mrf.mxu1 }
 0x2b4   :  { %v882_v55 = vpop.f32.mrf.mxu3 }
 0x2b5   :  { %v972_v56 = vpop.f32.mrf.mxu2  ;;  %v820_v30 = vpop.f32.mrf.mxu1  ;;  %v883_v61 = vadd.f32 %v882_v55, %v815_v54  ;;  %v1059_v55 = vld [vmem:[%s1927_s6] sm:$0x1] }
 0x2b7   :  { %v982_v2 = vadd.f32 %v972_v56, %v883_v61 }
 0x2b9   :  { %v1884_v38 = vadd.f32 %v1423_v37, %v982_v2 }
 0x2bb   :  { %v1003_v46 = vmul.f32 %v1884_v38, %v1884_v38 }
 0x2bc   :  { %v884_v57 = vpop.f32.mrf.mxu3 }
 0x2bd   :  { %v974_v51 = vpop.f32.mrf.mxu2  ;;  %v885_v60 = vadd.f32 %v884_v57, %v817_v28  ;;  %v822_v34 = vpop.f32.mrf.mxu1 }
 0x2bf   :  { %v983_v36 = vadd.f32 %v974_v51, %v885_v60  ;;  %v1075_v51 = vld [vmem:[%s1927_s6 + $0x1] sm:$0x1]  ;;  %s1515_s6 = smov [#allocation8]  }
 0x2c0   :  { %s1132_s26 = sshll.u32 %s1515_s6, 4  ;;  %s1133_s26 = int_to_ptr.vmem [resolvable:$true] %s1132_s26 }
 0x2c1   :  { %v1882_v5 = vadd.f32 %v1423_v37, %v983_v36  ;;  %v700_v36 = vperm.slane %v1877_v53, 1 }
 0x2c3   :  { %v1004_v10 = vmul.f32 %v1882_v5, %v1882_v5  ;;  %v994_v0 = vadd.f32 %v1882_v5, %v1884_v38 }
 0x2c4   :  { %v887_v62 = vpop.f32.mrf.mxu3 }
 0x2c5   :  { %v977_v63 = vpop.f32.mrf.mxu2  ;;  %v888_v1 = vadd.f32 %v887_v62, %v820_v30  ;;  %v1007_v14 = vadd.f32 %v1004_v10, %v1003_v46 }
 0x2c7   :  { %v984_v4 = vadd.f32 %v977_v63, %v888_v1  ;;  %v695_v63 = vperm.slane %v1877_v53, 0 }
 0x2c9   :  { %v1886_v39 = vadd.f32 %v1423_v37, %v984_v4  ;;  %v696_v1 = vmul.f32 %v695_v63, %v1789_v58  ;;  %v697_v2 = vmul.f32 %v695_v63, %v1791_v59  ;;  %v699_v4 = vmul.f32 %v695_v63, %v1829_v29 }
 0x2cb   :  { %v1005_v49 = vmul.f32 %v1886_v39, %v1886_v39  ;;  %v995_v15 = vadd.f32 %v994_v0, %v1886_v39  ;;  %v702_v53 = vadd.f32 %v700_v36, %v697_v2  ;;  %v704_v58 = vadd.f32 %v700_v36, %v699_v4 }
 0x2cc   :  { %v889_v7 = vpop.f32.mrf.mxu3 }
 0x2cd   :  { %v890_v11 = vadd.f32 %v889_v7, %v822_v34  ;;  %v979_v12 = vpop.f32.mrf.mxu2  ;;  %v1008_v3 = vadd.f32 %v1007_v14, %v1005_v49  ;;  %v701_v49 = vadd.f32 %v700_v36, %v696_v1 }
 0x2cf   :  { %v985_v13 = vadd.f32 %v979_v12, %v890_v11 }
 0x2d1   :  { %v993_v16 = vadd.f32 %v1423_v37, %v985_v13  ;;  %v698_v37 = vmul.f32 %v695_v63, %v1801_v6 }
 0x2d3   :  { %v996_v17 = vadd.f32 %v995_v15, %v993_v16  ;;  %v1006_v18 = vmul.f32 %v993_v16, %v993_v16  ;;  %v703_v13 = vadd.f32 %v700_v36, %v698_v37 }
 0x2d5   :  { %v997_v19 = vrot.slane %v996_v17, 4  ;;  %v1009_v20 = vadd.f32 %v1008_v3, %v1006_v18 }
 0x2d7   :  { %v998_v21 = vadd.f32 %v997_v19, %v996_v17  ;;  %v1010_v40 = vrot.slane %v1009_v20, 4 }
 0x2d9   :  { %v999_v22 = vrot.slane %v998_v21, 2  ;;  %v1011_v23 = vadd.f32 %v1010_v40, %v1009_v20 }
 0x2db   :  { %v1000_v24 = vadd.f32 %v999_v22, %v998_v21  ;;  %v1012_v31 = vrot.slane %v1011_v23, 2 }
 0x2dd   :  { %v1001_v32 = vrot.slane %v1000_v24, 1  ;;  %v1013_v35 = vadd.f32 %v1012_v31, %v1011_v23 }
 0x2df   :  { %v1014_v41 = vrot.slane %v1013_v35, 1  ;;  %v1002_v26 = vadd.f32 %v1001_v32, %v1000_v24 }
 0x2e1   :  { %v1015_v8 = vadd.f32 %v1014_v41, %v1013_v35 }
 0x2e3   :  { %v1016_v33 = vsel %vm494_vm7, %v1002_v26, %v1015_v8 }
 0x2e4   :  { %1049 = vmatmul.f32.vlgmr.msrb.gmra.mxu0 %v1016_v33 }
 0x361   :  { %v1050_v42 = vpop.f32.mrf.mxu0 }
 0x362   :  { %v1053_v9 = vmul.f32 0.001953125, %v1050_v42 }
 0x364   :  { %v1054_v43 = vmul.f32 %v1053_v9, %v1053_v9 }
 0x366   :  { %v1056_v25 = vrot.slane %v1054_v43, 7 }
 0x368   :  { %v1058_v44 = vsub.f32 %v1053_v9, %v1056_v25 }
 0x36a   :  { %v1060_v45 = vadd.f32 1e-05, %v1058_v44 }
 0x36c   :  { %1428 = vrsqrt.f32 %v1060_v45  ;;  %vm1067_vm0 = vweird.f32 %v1060_v45 }
 0x372   :  { %v1429_v27 = vpop.eup %1428 }
 0x373   :  { %v1062_v47 = vmul.f32 %v1429_v27, %v1060_v45  ;;  %vm1068_vm15 = vweird.f32 %v1429_v27 }
 0x374   :  { %vm1069_vm1 = vmor %vm1067_vm0, %vm1068_vm15 }
 0x375   :  { %v1063_v48 = vmul.f32 %v1429_v27, %v1062_v47 }
 0x377   :  { %v1064_v50 = vmul.f32 0.5, %v1063_v48 }
 0x379   :  { %v1065_v52 = vsub.f32 1.5, %v1064_v50 }
 0x37b   :  { %v1066_v54 = vmul.f32 %v1429_v27, %v1065_v52 }
 0x37d   :  { %v1070_v56 = vsel %vm1069_vm1, %v1429_v27, %v1066_v54 }
 0x37e   :  { %v1072_v28 = vrot.slane %v1070_v56, 1 }
 0x380   :  { %v1074_v57 = vmul.f32 %v1072_v28, %v1059_v55 }
 0x382   :  { %v1076_v60 = vmul.f32 %v1074_v57, %v1053_v9 }
 0x384   :  { %v1077_v30 = vsub.f32 %v1075_v51, %v1076_v60 }
 0x386   :  { %v1079_v61 = vrot.slane %v1077_v30, 7 }
 0x388   :  { %v1081_v62 = vsel %vm494_vm7, %v1074_v57, %v1079_v61 }
 0x389   :  { %1364 = vmatmul.msk.f32.vlgmr.msrb.gmra.mxu1 %vm562_vm14, %v1081_v62 }
 0x406   :  { %v1103_v34 = vpop.f32.mrf.mxu1 }
 0x407   :  { %v1106_v7 = vperm.slane %v1103_v34, 0  ;;  %v1111_v10 = vperm.slane %v1103_v34, 1 }
 0x409   :  { %v1107_v11 = vmul.f32 %v1106_v7, %v1884_v38  ;;  %v1108_v12 = vmul.f32 %v1106_v7, %v1882_v5  ;;  %v1109_v46 = vmul.f32 %v1106_v7, %v1886_v39  ;;  %v1110_v0 = vmul.f32 %v1106_v7, %v993_v16 }
 0x40b   :  { %v1112_v14 = vadd.f32 %v1111_v10, %v1107_v11  ;;  %v1113_v59 = vadd.f32 %v1111_v10, %v1108_v12  ;;  %v1114_v15 = vadd.f32 %v1111_v10, %v1109_v46  ;;  %v1115_v6 = vadd.f32 %v1111_v10, %v1110_v0 }
 0x40d   :  { %v1116_v3 = vadd.f32 %v1112_v14, %v701_v49  ;;  %v1117_v29 = vadd.f32 %v1113_v59, %v702_v53  ;;  %v1118_v17 = vadd.f32 %v1114_v15, %v703_v13  ;;  %v1119_v18 = vadd.f32 %v1115_v6, %v704_v58 }
 0x40f   :  { %v1120_v19 = vmax.f32 %v1116_v3, 0.0  ;;  %v1121_v20 = vmax.f32 %v1117_v29, 0.0  ;;  %v1122_v38 = vmax.f32 %v1118_v17, 0.0  ;;  %v1123_v5 = vmax.f32 %v1119_v18, 0.0 }
 0x411   :  { %1124 = vst [vmem:[#allocation8] sm:$0xff] %v1120_v19 }
 0x412   :  { %1125 = vst [vmem:[#allocation8 + $0x8] sm:$0xff] %v1121_v20 }
 0x413   :  { %1126 = vst [vmem:[#allocation8 + $0x10] sm:$0xff] %v1122_v38 }
 0x414   :  { %1127 = vst [vmem:[#allocation8 + $0x18] sm:$0xff] %v1123_v5 }
 0x415   :  { %1140 = dma.vmem_to_hbm [thread:$0]  %s1133_s26, 512, %s1135_s29, [#allocation5], %s1509_s21, %s1509_s21, %s1510_s22  }
 0x416   :  { %1506 = dma.done.wait [#allocation5], 512  }
 0x417   :  { %1507 = vsyncadd [#allocation5], 4294966784 }
 0x418   :  { %1145 = vsyncpa [#allocation4], 1 }
 0x419   :  { %1146 = vsyncpa [#allocation7], 1 }
 0x41a   :  { %1147 = vsyncpa [#allocation5], 1 }

</bundles_post_ra>
